<compile_context>
chip_gen: v5e
topology: v5e:2x2
jax: 0.10.0
libtpu: 0.0.40
codegen_flags: <defaults>
</compile_context>

<pallas_src>
import math

import jax
import jax.numpy as jnp
from jax.experimental import pallas as pl
from jax.experimental.pallas import tpu as pltpu

BN_EPS = 1e-5

_MAX_TILE = 1024   # rows per grid step; re-budget VMEM before raising past ~8K
_MIN_SPLIT = 128   # don't split batches smaller than this: step overhead dominates


def _mlp_readout_kernel(
    x_ref,
    w1_ref, b1_ref,      # Linear1 with BN1 folded (w1 bf16 column-scaled, b1 f32)
    w2_ref, b2_ref,      # Linear2 with BN2 scale folded (w2 bf16, b2 f32)
    t2_ref,              # BN2 shift (f32)
    w3_ref, b3_ref,      # Linear3 (w3 bf16, b3 f32)
    o_ref,
):
    # --- Linear(input_dim, 256) + folded BatchNorm1d(256) ---
    # x may arrive as f32 or bf16; astype is a no-op for bf16 producers.
    x = x_ref[...].astype(jnp.bfloat16)
    h = jnp.dot(x, w1_ref[...], preferred_element_type=jnp.float32) + b1_ref[...]
    h = jnp.maximum(h, 0.0)                 # ReLU (Dropout(0.2) = identity in eval)

    # --- Linear(256, 128) with BN2's positive scale folded into the weights ---
    h = jnp.dot(h.astype(jnp.bfloat16), w2_ref[...],
                preferred_element_type=jnp.float32) + b2_ref[...]
    h = jnp.maximum(h, 0.0)                 # ReLU
    h = jnp.maximum(h + t2_ref[...], 0.0)   # BN2 shift + ReLU (Dropout = identity)

    # --- Linear(128, output_dim) ---
    logits = jnp.dot(h.astype(jnp.bfloat16), w3_ref[...],
                     preferred_element_type=jnp.float32) + b3_ref[...]

    # --- Softmax over the class axis (see TODO at top re: dim=2) ---
    # NOTE: out_dim is tiny (4), so this tail runs on lane-sparse vregs and the
    # store is a masked vst; kept narrow knowingly (output bytes are small and
    # the compute is confined to the narrow logits).
    # TODO(synk): switch to a lane-dense (tm*out_dim//128, 128) output slab if
    #             the softmax tail ever shows up as the binding unit.
    z = logits - jnp.max(logits, axis=-1, keepdims=True)
    e = jnp.exp(z)
    o_ref[...] = e * pl.reciprocal(jnp.sum(e, axis=-1, keepdims=True), approx=True)


def _round_up(n, m):
    return ((n + m - 1) // m) * m


def _choose_tiling(batch):
    """Pick (rows_per_tile, grid_steps) for the batch axis.

    Small batches: one 8-row-aligned tile. Larger batches: fixed big tile via
    cdiv, nudged to an even step count so v7x's two TensorCores split the
    'parallel' axis evenly (costs at most one extra ~0.35us step elsewhere).
    """
    if batch <= _MIN_SPLIT:
        return _round_up(max(batch, 8), 8), 1
    steps = max(2, pl.cdiv(batch, _MAX_TILE))
    if steps % 2:
        steps += 1
    tm = _round_up(pl.cdiv(batch, steps), 8)
    return tm, steps


def auto_nn_readout_forward(x, params):
    """AutoNNReadout eval-mode forward in a single Pallas call.

    The whole weight set (~100 KB as bf16) stays VMEM-resident for every grid
    step (constant index_maps); only x / output tiles are pipelined over the
    batch grid, which is marked "parallel" for megacore sharding.
    """
    batch, in_dim = x.shape
    h1 = params["w1"].shape[1]
    h2 = params["w2"].shape[1]
    out_dim = params["w3"].shape[1]

    tm, steps = _choose_tiling(batch)
    padded = tm * steps
    if padded != batch:
        # Zero-pad the ragged edge so the last tile's softmax runs on
        # well-defined (finite) rows; padded outputs are sliced off below.
        x = jnp.pad(x, ((0, padded - batch), (0, 0)))

    args = (
        x,
        params["w1"], params["b1"],
        params["w2"], params["b2"],
        params["t2"],
        params["w3"], params["b3"],
    )

    in_specs = [
        pl.BlockSpec((tm, in_dim), lambda i: (i, 0)),               # x: batch-tiled
        pl.BlockSpec(params["w1"].shape, lambda i: (0, 0)),         # weights stay
        pl.BlockSpec(params["b1"].shape, lambda i: (0, 0)),         # VMEM-resident
        pl.BlockSpec(params["w2"].shape, lambda i: (0, 0)),
        pl.BlockSpec(params["b2"].shape, lambda i: (0, 0)),
        pl.BlockSpec(params["t2"].shape, lambda i: (0, 0)),
        pl.BlockSpec(params["w3"].shape, lambda i: (0, 0)),
        pl.BlockSpec(params["b3"].shape, lambda i: (0, 0)),
    ]
    out_spec = pl.BlockSpec((tm, out_dim), lambda i: (i, 0))

    flops = 2 * padded * (in_dim * h1 + h1 * h2 + h2 * out_dim)
    bytes_accessed = (sum(a.size * a.dtype.itemsize for a in args)
                      + padded * out_dim * 4)
    cost = pl.CostEstimate(
        flops=flops,
        transcendentals=padded * (out_dim + 1),   # exp per logit + 1 recip per row
        bytes_accessed=bytes_accessed,
    )

    out = pl.pallas_call(
        _mlp_readout_kernel,
        out_shape=jax.ShapeDtypeStruct((padded, out_dim), jnp.float32),
        grid=(steps,),
        in_specs=in_specs,
        out_specs=out_spec,
        cost_estimate=cost,
        compiler_params=pltpu.CompilerParams(dimension_semantics=("parallel",)),
    )(*args)

    return out[:batch] if padded != batch else out


def init_raw_params(key, input_dim, output_dim):
    """PyTorch-default-style raw parameters (f32, weights stored as (in, out))."""
    h1, h2 = 256, 128
    ks = jax.random.split(key, 6)

    def linear(kw, kb, fan_in, fan_out):
        bound = 1.0 / math.sqrt(fan_in)
        w = jax.random.uniform(kw, (fan_in, fan_out), jnp.float32, -bound, bound)
        b = jax.random.uniform(kb, (1, fan_out), jnp.float32, -bound, bound)
        return w, b

    w1, b1 = linear(ks[0], ks[1], input_dim, h1)
    w2, b2 = linear(ks[2], ks[3], h1, h2)
    w3, b3 = linear(ks[4], ks[5], h2, output_dim)

    return {
        "w1": w1, "b1": b1,
        "g1": jnp.ones((1, h1), jnp.float32), "be1": jnp.zeros((1, h1), jnp.float32),
        "m1": jnp.zeros((1, h1), jnp.float32), "v1": jnp.ones((1, h1), jnp.float32),
        "w2": w2, "b2": b2,
        "g2": jnp.ones((1, h2), jnp.float32), "be2": jnp.zeros((1, h2), jnp.float32),
        "m2": jnp.zeros((1, h2), jnp.float32), "v2": jnp.ones((1, h2), jnp.float32),
        "w3": w3, "b3": b3,
    }


def prepare_params(raw):
    """One-time transform:
      * fold BN1 into Linear1 (column-scale w1, shift b1),
      * fold BN2's per-channel scale into Linear2 (valid because s2 > 0:
        relu(z)*s2 == relu(z*s2)), keeping only the shift t2,
      * cast weight matrices to bf16 (biases / shifts stay f32).
    """
    s1 = raw["g1"] * jax.lax.rsqrt(raw["v1"] + BN_EPS)             # (1, 256)
    w1f = (raw["w1"] * s1).astype(jnp.bfloat16)                    # column-scaled
    b1f = (raw["b1"] - raw["m1"]) * s1 + raw["be1"]                # f32

    s2 = raw["g2"] * jax.lax.rsqrt(raw["v2"] + BN_EPS)             # (1, 128)
    if not bool(jnp.all(s2 > 0)):
        # TODO(synk): keep an explicit (s2, t2) pair in the kernel if BN2's
        #             gamma can go non-positive after training.
        raise ValueError("BN2 scale fold into Linear2 requires positive scale")
    w2f = (raw["w2"] * s2).astype(jnp.bfloat16)
    b2f = raw["b2"] * s2
    t2 = raw["be2"] - raw["m2"] * s2

    return {
        "w1": w1f, "b1": b1f,
        "w2": w2f, "b2": b2f, "t2": t2,
        "w3": raw["w3"].astype(jnp.bfloat16), "b3": raw["b3"],
    }


def reference_forward_prepared(x, p):
    """Pure-JAX reference using the same prepared (folded, bf16) parameters."""
    h = jnp.dot(x.astype(jnp.bfloat16), p["w1"],
                preferred_element_type=jnp.float32) + p["b1"]
    h = jnp.maximum(h, 0.0)
    h = jnp.dot(h.astype(jnp.bfloat16), p["w2"],
                preferred_element_type=jnp.float32) + p["b2"]
    h = jnp.maximum(h, 0.0)
    h = jnp.maximum(h + p["t2"], 0.0)
    logits = jnp.dot(h.astype(jnp.bfloat16), p["w3"],
                     preferred_element_type=jnp.float32) + p["b3"]
    return jax.nn.softmax(logits, axis=-1)


def reference_forward_raw(x, raw):
    """Full-f32 reference of the eval-mode module (no folding, no bf16)."""
    h = x @ raw["w1"] + raw["b1"]
    h = (h - raw["m1"]) / jnp.sqrt(raw["v1"] + BN_EPS) * raw["g1"] + raw["be1"]
    h = jnp.maximum(h, 0.0)
    h = h @ raw["w2"] + raw["b2"]
    h = jnp.maximum(h, 0.0)
    h = (h - raw["m2"]) / jnp.sqrt(raw["v2"] + BN_EPS) * raw["g2"] + raw["be2"]
    h = jnp.maximum(h, 0.0)
    logits = h @ raw["w3"] + raw["b3"]
    return jax.nn.softmax(logits, axis=-1)


if __name__ == "__main__":
    # Shapes consistent with the module: input_dim (= reshape_factor) = 64,
    # output_dim = 4 classes.
    input_dim = 64
    output_dim = 4

    key = jax.random.PRNGKey(0)
    k_params, k_x1, k_x2 = jax.random.split(key, 3)

    raw = init_raw_params(k_params, input_dim, output_dim)
    params = prepare_params(raw)

    # Case 1: module's default batch_size=8 (single grid step).
    x_small = jax.random.normal(k_x1, (8, input_dim), jnp.float32)
    # Case 2: batch not divisible by the tile (2 parallel steps + edge padding).
    x_big = jax.random.normal(k_x2, (200, input_dim), jnp.float32)

    for x in (x_small, x_big):
        out = jax.block_until_ready(auto_nn_readout_forward(x, params))
        assert out.shape == (x.shape[0], output_dim)

        # Tight check vs. an identical bf16/folded reference (differences come
        # only from the approx EUP reciprocal in the softmax).
        ref_prep = reference_forward_prepared(x, params)
        assert jnp.allclose(out, ref_prep, atol=2e-3, rtol=2e-3), \
            "mismatch vs prepared (bf16/folded) reference"

        # Looser check vs. the true f32 module semantics (bf16 quantization).
        ref_raw = reference_forward_raw(x, raw)
        assert jnp.allclose(out, ref_raw, atol=2e-2, rtol=2e-2), \
            "mismatch vs raw f32 reference"

        assert jnp.allclose(jnp.sum(out, axis=-1), 1.0, atol=5e-3), \
            "softmax rows must sum to 1"

    print("KERNEL_OK")
</pallas_src>

<mosaic_0001>
module attributes {stable_mosaic.version = 11 : i64} {
  func.func @_mlp_readout_kernel(%arg0: i32, %arg1: memref<8x64xf32, #tpu.memory_space<vmem>>, %arg2: memref<64x256xbf16, #tpu.memory_space<vmem>>, %arg3: memref<1x256xf32, #tpu.memory_space<vmem>>, %arg4: memref<256x128xbf16, #tpu.memory_space<vmem>>, %arg5: memref<1x128xf32, #tpu.memory_space<vmem>>, %arg6: memref<1x128xf32, #tpu.memory_space<vmem>>, %arg7: memref<128x4xbf16, #tpu.memory_space<vmem>>, %arg8: memref<1x4xf32, #tpu.memory_space<vmem>>, %arg9: memref<8x4xf32, #tpu.memory_space<vmem>>) attributes {dimension_semantics = [#tpu.dimension_semantics<parallel>], iteration_bounds = array<i64: 1>, scalar_prefetch = 0 : i64, scratch_operands = 0 : i64, tpu.core_type = #tpu.core_type<tc>, window_params = [{transform_indices = @transform_0, window_bounds = array<i64: 8, 64>}, {pipeline_mode = #tpu.pipeline_mode<synchronous>, transform_indices = @transform_1, window_bounds = array<i64: 64, 256>}, {pipeline_mode = #tpu.pipeline_mode<synchronous>, transform_indices = @transform_2, window_bounds = array<i64: 1, 256>}, {pipeline_mode = #tpu.pipeline_mode<synchronous>, transform_indices = @transform_3, window_bounds = array<i64: 256, 128>}, {pipeline_mode = #tpu.pipeline_mode<synchronous>, transform_indices = @transform_4, window_bounds = array<i64: 1, 128>}, {pipeline_mode = #tpu.pipeline_mode<synchronous>, transform_indices = @transform_5, window_bounds = array<i64: 1, 128>}, {pipeline_mode = #tpu.pipeline_mode<synchronous>, transform_indices = @transform_6, window_bounds = array<i64: 128, 4>}, {pipeline_mode = #tpu.pipeline_mode<synchronous>, transform_indices = @transform_7, window_bounds = array<i64: 1, 4>}, {transform_indices = @transform_8, window_bounds = array<i64: 8, 4>}]} {
    %c0 = arith.constant 0 : index
    %c0_0 = arith.constant 0 : index
    %0 = vector.load %arg1[%c0, %c0_0] : memref<8x64xf32, #tpu.memory_space<vmem>>, vector<8x64xf32>
    %1 = arith.truncf %0 : vector<8x64xf32> to vector<8x64xbf16>
    %c0_1 = arith.constant 0 : index
    %c0_2 = arith.constant 0 : index
    %2 = vector.load %arg2[%c0_1, %c0_2] : memref<64x256xbf16, #tpu.memory_space<vmem>>, vector<64x256xbf16>
    %cst = arith.constant dense<0.000000e+00> : vector<8x256xf32>
    %3 = tpu.matmul %1, %2, %cst {dimension_numbers = #tpu.dot_dimension_numbers<[1], [0], [0], [1], [0, 0, 1, 1], [], []>} : vector<8x64xbf16>, vector<64x256xbf16>, vector<8x256xf32> -> vector<8x256xf32>
    %c0_3 = arith.constant 0 : index
    %c0_4 = arith.constant 0 : index
    %4 = vector.load %arg3[%c0_3, %c0_4] : memref<1x256xf32, #tpu.memory_space<vmem>>, vector<1x256xf32>
    %5 = vector.broadcast %4 : vector<1x256xf32> to vector<8x256xf32>
    %6 = arith.addf %3, %5 : vector<8x256xf32>
    %cst_5 = arith.constant 0.000000e+00 : f32
    %7 = vector.broadcast %cst_5 : f32 to vector<8x256xf32>
    %8 = arith.maximumf %6, %7 : vector<8x256xf32>
    %9 = arith.truncf %8 : vector<8x256xf32> to vector<8x256xbf16>
    %c0_6 = arith.constant 0 : index
    %c0_7 = arith.constant 0 : index
    %10 = vector.load %arg4[%c0_6, %c0_7] : memref<256x128xbf16, #tpu.memory_space<vmem>>, vector<256x128xbf16>
    %cst_8 = arith.constant dense<0.000000e+00> : vector<8x128xf32>
    %11 = tpu.matmul %9, %10, %cst_8 {dimension_numbers = #tpu.dot_dimension_numbers<[1], [0], [0], [1], [0, 0, 1, 1], [], []>} : vector<8x256xbf16>, vector<256x128xbf16>, vector<8x128xf32> -> vector<8x128xf32>
    %c0_9 = arith.constant 0 : index
    %c0_10 = arith.constant 0 : index
    %12 = vector.load %arg5[%c0_9, %c0_10] : memref<1x128xf32, #tpu.memory_space<vmem>>, vector<1x128xf32>
    %13 = vector.broadcast %12 : vector<1x128xf32> to vector<8x128xf32>
    %14 = arith.addf %11, %13 : vector<8x128xf32>
    %cst_11 = arith.constant 0.000000e+00 : f32
    %15 = vector.broadcast %cst_11 : f32 to vector<8x128xf32>
    %16 = arith.maximumf %14, %15 : vector<8x128xf32>
    %c0_12 = arith.constant 0 : index
    %c0_13 = arith.constant 0 : index
    %17 = vector.load %arg6[%c0_12, %c0_13] : memref<1x128xf32, #tpu.memory_space<vmem>>, vector<1x128xf32>
    %18 = vector.broadcast %17 : vector<1x128xf32> to vector<8x128xf32>
    %19 = arith.addf %16, %18 : vector<8x128xf32>
    %cst_14 = arith.constant 0.000000e+00 : f32
    %20 = vector.broadcast %cst_14 : f32 to vector<8x128xf32>
    %21 = arith.maximumf %19, %20 : vector<8x128xf32>
    %22 = arith.truncf %21 : vector<8x128xf32> to vector<8x128xbf16>
    %c0_15 = arith.constant 0 : index
    %c0_16 = arith.constant 0 : index
    %23 = vector.load %arg7[%c0_15, %c0_16] : memref<128x4xbf16, #tpu.memory_space<vmem>>, vector<128x4xbf16>
    %cst_17 = arith.constant dense<0.000000e+00> : vector<8x4xf32>
    %24 = tpu.matmul %22, %23, %cst_17 {dimension_numbers = #tpu.dot_dimension_numbers<[1], [0], [0], [1], [0, 0, 1, 1], [], []>} : vector<8x128xbf16>, vector<128x4xbf16>, vector<8x4xf32> -> vector<8x4xf32>
    %c0_18 = arith.constant 0 : index
    %c0_19 = arith.constant 0 : index
    %25 = vector.load %arg8[%c0_18, %c0_19] : memref<1x4xf32, #tpu.memory_space<vmem>>, vector<1x4xf32>
    %26 = vector.broadcast %25 : vector<1x4xf32> to vector<8x4xf32>
    %27 = arith.addf %24, %26 : vector<8x4xf32>
    %cst_20 = arith.constant dense<0xFF800000> : vector<8xf32>
    %28 = vector.multi_reduction <maximumf>, %27, %cst_20 [1] : vector<8x4xf32> to vector<8xf32>
    %29 = vector.shape_cast %28 : vector<8xf32> to vector<8x1xf32>
    %30 = vector.broadcast %29 : vector<8x1xf32> to vector<8x4xf32>
    %31 = arith.subf %27, %30 : vector<8x4xf32>
    %32 = math.exp %31 : vector<8x4xf32>
    %cst_21 = arith.constant dense<0.000000e+00> : vector<8xf32>
    %33 = vector.multi_reduction <add>, %32, %cst_21 [1] : vector<8x4xf32> to vector<8xf32>
    %34 = vector.shape_cast %33 : vector<8xf32> to vector<8x1xf32>
    %35 = tpu.reciprocal %34 {approx = true} : vector<8x1xf32> -> vector<8x1xf32>
    %36 = vector.broadcast %35 : vector<8x1xf32> to vector<8x4xf32>
    %37 = arith.mulf %32, %36 : vector<8x4xf32>
    %c0_22 = arith.constant 0 : index
    %c0_23 = arith.constant 0 : index
    %38 = vector.load %arg9[%c0_22, %c0_23] : memref<8x4xf32, #tpu.memory_space<vmem>>, vector<8x4xf32>
    tpu.vector_store %arg9[%c0_22, %c0_23], %37 {strides = array<i32>} : memref<8x4xf32, #tpu.memory_space<vmem>>, vector<8x4xf32>,
    return
  }
  func.func @transform_0(%arg0: i32) -> (i32, i32) {
    %c0_i32 = arith.constant 0 : i32
    %c0_i32_0 = arith.constant 0 : i32
    return %arg0, %c0_i32 : i32, i32
  }
  func.func @transform_1(%arg0: i32) -> (i32, i32) {
    %c0_i32 = arith.constant 0 : i32
    %c0_i32_0 = arith.constant 0 : i32
    %c0_i32_1 = arith.constant 0 : i32
    return %c0_i32, %c0_i32_0 : i32, i32
  }
  func.func @transform_2(%arg0: i32) -> (i32, i32) {
    %c0_i32 = arith.constant 0 : i32
    %c0_i32_0 = arith.constant 0 : i32
    %c0_i32_1 = arith.constant 0 : i32
    return %c0_i32, %c0_i32_0 : i32, i32
  }
  func.func @transform_3(%arg0: i32) -> (i32, i32) {
    %c0_i32 = arith.constant 0 : i32
    %c0_i32_0 = arith.constant 0 : i32
    %c0_i32_1 = arith.constant 0 : i32
    return %c0_i32, %c0_i32_0 : i32, i32
  }
  func.func @transform_4(%arg0: i32) -> (i32, i32) {
    %c0_i32 = arith.constant 0 : i32
    %c0_i32_0 = arith.constant 0 : i32
    %c0_i32_1 = arith.constant 0 : i32
    return %c0_i32, %c0_i32_0 : i32, i32
  }
  func.func @transform_5(%arg0: i32) -> (i32, i32) {
    %c0_i32 = arith.constant 0 : i32
    %c0_i32_0 = arith.constant 0 : i32
    %c0_i32_1 = arith.constant 0 : i32
    return %c0_i32, %c0_i32_0 : i32, i32
  }
  func.func @transform_6(%arg0: i32) -> (i32, i32) {
    %c0_i32 = arith.constant 0 : i32
    %c0_i32_0 = arith.constant 0 : i32
    %c0_i32_1 = arith.constant 0 : i32
    return %c0_i32, %c0_i32_0 : i32, i32
  }
  func.func @transform_7(%arg0: i32) -> (i32, i32) {
    %c0_i32 = arith.constant 0 : i32
    %c0_i32_0 = arith.constant 0 : i32
    %c0_i32_1 = arith.constant 0 : i32
    return %c0_i32, %c0_i32_0 : i32, i32
  }
  func.func @transform_8(%arg0: i32) -> (i32, i32) {
    %c0_i32 = arith.constant 0 : i32
    %c0_i32_0 = arith.constant 0 : i32
    return %arg0, %c0_i32 : i32, i32
  }
}

</mosaic_0001>

<bundles_post_ra>
// kernel: tpu_custom_call.1
= control target key start
LH: loop header
LB: loop body
LE: loop exit
PB: predicated region body
PF: predicated region fallthrough
CT: control target
= control target key end

     0   :  { %13 = vsyncpa [#allocation3], 0  ;;  %s788_s0 = inlined_call_operand.hbm [shape: f32[8,64], index: 0, kind: input, shape index: {}]   ;;  %s789_s1 = inlined_call_operand.vmem [shape: bf16[64,256], index: 1, kind: input, shape index: {}]   ;;  %s790_s2 = inlined_call_operand.vmem [shape: f32[1,256], index: 2, kind: input, shape index: {}]   ;;  %s791_s3 = inlined_call_operand.hbm [shape: bf16[256,128], index: 3, kind: input, shape index: {}]   ;;  %s792_s4 = inlined_call_operand.vmem [shape: f32[1,128], index: 4, kind: input, shape index: {}]   ;;  %s793_s5 = inlined_call_operand.vmem [shape: f32[1,128], index: 5, kind: input, shape index: {}]   ;;  %s794_s6 = inlined_call_operand.vmem [shape: bf16[128,4], index: 6, kind: input, shape index: {}]   ;;  %s795_s7 = inlined_call_operand.vmem [shape: f32[1,4], index: 7, kind: input, shape index: {}]   ;;  %s796_s8 = inlined_call_operand.vmem [shape: f32[8,4], index: 8, kind: output, shape index: {}]  }
   0x1   :  { %s20_s29 = sshll.u32 %s788_s0, 4  ;;  %s21_s29 = int_to_ptr.hbm [resolvable:$true] %s20_s29 }
   0x2   :  { %14 = vsyncpa [#allocation5], 0  ;;  %s641_s30 = smov [#allocation2]   ;;  %s34_s12 = sshll.u32 %s791_s3, 4  ;;  %s35_s12 = int_to_ptr.hbm [resolvable:$true] %s34_s12 }
   0x3   :  { %s22_s9 = sshll.u32 %s641_s30, 4  ;;  %s642_s13 = smov [#allocation4]   ;;  %s23_s9 = int_to_ptr.vmem [resolvable:$true] %s22_s9 }
   0x4   :  { %25 = dma.hbm_to_vmem [thread:$0]  %s21_s29, 128, %s23_s9, [#allocation3]  }
   0x5   :  { %s36_s14 = sshll.u32 %s642_s13, 4  ;;  %s643_s15 = smov 64   ;;  %s37_s14 = int_to_ptr.vmem [resolvable:$true] %s36_s14 }
   0x6   :  { %s644_s16 = smov 4  }
   0x7   :  { %42 = dma.hbm_to_vmem [thread:$0]  %s35_s12, 2048, %s37_s14, [#allocation5], %s643_s15, %s643_s15, %s644_s16  }
   0x8   :  { %637 = dma.done.wait [#allocation3], 128  }
   0x9   :  { %638 = vsyncadd [#allocation3], 4294967168 }
   0xa   :  { %639 = dma.done.wait [#allocation5], 2048  }
   0xb   :  { %640 = vsyncadd [#allocation5], 4294965248  ;;  %v442_v0 = vld [vmem:[%s789_s1 + $0x30] sm:$0xf]  ;;  %v553_v1 = vld [vmem:[%s789_s1 + $0x34] sm:$0xf0] }
   0xc   :  { %v434_v2 = vld [vmem:[%s789_s1 + $0x20] sm:$0xf]  ;;  %v443_v3 = vor.u32 %v553_v1, %v442_v0  ;;  %v551_v4 = vld [vmem:[%s789_s1 + $0x24] sm:$0xf0]  ;;  %v426_v6 = vld [vmem:[%s789_s1 + $0x10] sm:$0xf] }
   0xd   :  { %v435_v5 = vor.u32 %v551_v4, %v434_v2  ;;  %v549_v7 = vld [vmem:[%s789_s1 + $0x14] sm:$0xf0]  ;;  %v561_v8 = vld [vmem:[#allocation4 + $0x38] sm:$0xff]  ;;  %v547_v11 = vld [vmem:[%s789_s1 + $0x4] sm:$0xf0]  ;;  %vm116_vm0 = vcmask 523264  }
   0xe   :  { %124 = vmatpush.bf16.msra.mxu1 %v443_v3  ;;  %v418_v9 = vld [vmem:[%s789_s1] sm:$0xf]  ;;  %v427_v10 = vor.u32 %v549_v7, %v426_v6  ;;  %282 = vmatpush.bf16.msra.mxu2 %v561_v8  ;;  %v560_v12 = vld [vmem:[#allocation4 + $0x30] sm:$0xff]  ;;  %v552_v14 = vld [vmem:[%s789_s1 + $0x34] sm:$0xf]  ;;  %vm397_vm1 = vcmask 31744  }
   0xf   :  { %v569_v13 = vld [vmem:[#allocation4 + $0x78] sm:$0xff]  ;;  %v444_v15 = vld [vmem:[%s789_s1 + $0x38] sm:$0xf0]  ;;  %v419_v17 = vor.u32 %v547_v11, %v418_v9  ;;  %v559_v19 = vld [vmem:[#allocation4 + $0x28] sm:$0xff] }
  0x10   :  { %295 = vmatpush.bf16.msra.mxu3 %v569_v13  ;;  %v568_v16 = vld [vmem:[#allocation4 + $0x70] sm:$0xff]  ;;  %v60_v18 = vld [vmem:[#allocation2] sm:$0xff]  ;;  %v447_v20 = vor.u32 %v552_v14, %v444_v15  ;;  %v436_v22 = vld [vmem:[%s789_s1 + $0x28] sm:$0xf0] }
  0x11   :  { %v550_v21 = vld [vmem:[%s789_s1 + $0x24] sm:$0xf]  ;;  %v61_v23 = vpack.c.bf16 %v60_v18, %v60_v18  ;;  %v558_v24 = vld [vmem:[#allocation4 + $0x20] sm:$0xff]  ;;  %v548_v26 = vld [vmem:[%s789_s1 + $0x14] sm:$0xf] }
  0x12   :  { %125 = vmatpush.bf16.msra.mxu1 %v435_v5  ;;  %283 = vmatpush.bf16.msra.mxu2 %v560_v12  ;;  %v439_v25 = vor.u32 %v550_v21, %v436_v22  ;;  %v428_v27 = vld [vmem:[%s789_s1 + $0x18] sm:$0xf0]  ;;  %v557_v28 = vld [vmem:[#allocation4 + $0x18] sm:$0xff]  ;;  %v420_v31 = vld [vmem:[%s789_s1 + $0x8] sm:$0xf0] }
  0x13   :  { %v431_v29 = vor.u32 %v548_v26, %v428_v27  ;;  %v546_v30 = vld [vmem:[%s789_s1 + $0x4] sm:$0xf]  ;;  %v556_v32 = vld [vmem:[#allocation4 + $0x10] sm:$0xff]  ;;  %v555_v34 = vld [vmem:[#allocation4 + $0x8] sm:$0xff] }
  0x14   :  { %296 = vmatpush.bf16.msra.mxu3 %v568_v16  ;;  %v423_v33 = vor.u32 %v546_v30, %v420_v31  ;;  %v567_v35 = vld [vmem:[#allocation4 + $0x68] sm:$0xff]  ;;  %v554_v36 = vld [vmem:[#allocation4] sm:$0xff]  ;;  %v565_v38 = vld [vmem:[#allocation4 + $0x58] sm:$0xff] }
  0x15   :  { %v566_v37 = vld [vmem:[#allocation4 + $0x60] sm:$0xff]  ;;  %v564_v39 = vld [vmem:[#allocation4 + $0x50] sm:$0xff]  ;;  %v563_v40 = vld [vmem:[#allocation4 + $0x48] sm:$0xff] }
  0x16   :  { %126 = vmatpush.bf16.msra.mxu1 %v427_v10  ;;  %284 = vmatpush.bf16.msra.mxu2 %v559_v19  ;;  %v562_v41 = vld [vmem:[#allocation4 + $0x40] sm:$0xff]  ;;  %v577_v42 = vld [vmem:[%s794_s6 + $0x38] sm:$0xff]  ;;  %v70_v43 = vld [vmem:[%s790_s2] sm:$0x3] }
  0x17   :  { %384 = vmatpush.bf16.msra.mxu0 %v577_v42  ;;  %v72_v44 = vperm.slane %v70_v43, 0  ;;  %v73_v50 = vperm.slane %v70_v43, 1  ;;  %v576_v56 = vld [vmem:[%s794_s6 + $0x30] sm:$0xff]  ;;  %v575_v57 = vld [vmem:[%s794_s6 + $0x28] sm:$0xff]  ;;  %v574_v58 = vld [vmem:[%s794_s6 + $0x20] sm:$0xff] }
  0x18   :  { %297 = vmatpush.bf16.msra.mxu3 %v567_v35  ;;  %v573_v59 = vld [vmem:[%s794_s6 + $0x18] sm:$0xff]  ;;  %v572_v60 = vld [vmem:[%s794_s6 + $0x10] sm:$0xff]  ;;  %v571_v61 = vld [vmem:[%s794_s6 + $0x8] sm:$0xff] }
  0x19   :  { %v570_v62 = vld [vmem:[%s794_s6] sm:$0xff] }
  0x1a   :  { %127 = vmatpush.bf16.msra.mxu1 %v419_v17  ;;  %285 = vmatpush.bf16.msra.mxu2 %v558_v24  ;;  %v582_v1 = vld [vmem:[%s792_s4] ss:$0 sm:$0xff] }
  0x1b   :  { %385 = vmatpush.bf16.msra.mxu0 %v576_v56  ;;  %v583_v5 = vld [vmem:[%s793_s5] ss:$0 sm:$0xff] }
  0x1c   :  { %298 = vmatpush.bf16.msra.mxu3 %v566_v37  ;;  %v584_v11 = vld [vmem:[%s795_s7] ss:$0 sm:$0xff] }
  0x1d   :  { %448 = vmatmul.msk.bf16.vlgmr.msra.gmra.mxu1 %vm116_vm0, %v61_v23 }
  0x1e   :  { %137 = vmatpush.bf16.msrb.mxu1 %v447_v20  ;;  %286 = vmatpush.bf16.msra.mxu2 %v557_v28 }
  0x1f   :  { %386 = vmatpush.bf16.msra.mxu0 %v575_v57 }
  0x20   :  { %299 = vmatpush.bf16.msra.mxu3 %v565_v38 }
  0x22   :  { %138 = vmatpush.bf16.msrb.mxu1 %v439_v25  ;;  %287 = vmatpush.bf16.msra.mxu2 %v556_v32 }
  0x23   :  { %387 = vmatpush.bf16.msra.mxu0 %v574_v58 }
  0x24   :  { %300 = vmatpush.bf16.msra.mxu3 %v564_v39 }
  0x26   :  { %139 = vmatpush.bf16.msrb.mxu1 %v431_v29  ;;  %288 = vmatpush.bf16.msra.mxu2 %v555_v34 }
  0x27   :  { %388 = vmatpush.bf16.msra.mxu0 %v573_v59 }
  0x28   :  { %301 = vmatpush.bf16.msra.mxu3 %v563_v40 }
  0x2a   :  { %140 = vmatpush.bf16.msrb.mxu1 %v423_v33  ;;  %289 = vmatpush.bf16.msra.mxu2 %v554_v36 }
  0x2b   :  { %389 = vmatpush.bf16.msra.mxu0 %v572_v60 }
  0x2c   :  { %302 = vmatpush.bf16.msra.mxu3 %v562_v41 }
  0x2d   :  { %449 = vmatmul.msk.bf16.vlgmr.msrb.gmra.mxu1 %vm116_vm0, %v61_v23 }
  0x2f   :  { %390 = vmatpush.bf16.msra.mxu0 %v571_v61 }
  0x33   :  { %391 = vmatpush.bf16.msra.mxu0 %v570_v62 }
  0x9a   :  { %v129_v45 = vpop.f32.mrf.mxu1 }
  0x9b   :  { %v130_v46 = vadd.f32 %v129_v45, %v72_v44 }
  0x9d   :  { %v146_v47 = vmax.f32 %v130_v46, 0.0 }
  0x9f   :  { %v148_v48 = vpack.c.bf16 %v146_v47, %v146_v47 }
  0xa1   :  { %290 = vmatmul.bf16.vlgmr.msra.gmra.mxu2 %v148_v48 }
  0xa2   :  { %v131_v49 = vpop.f32.mrf.mxu1 }
  0xaa   :  { %v142_v51 = vpop.f32.mrf.mxu1 }
  0xab   :  { %v143_v52 = vadd.f32 %v142_v51, %v73_v50 }
  0xad   :  { %v147_v53 = vmax.f32 %v143_v52, 0.0 }
  0xaf   :  { %v149_v54 = vpack.c.bf16 %v147_v53, %v147_v53 }
  0xb1   :  { %303 = vmatmul.bf16.vlgmr.msra.gmra.mxu3 %v149_v54 }
  0xb2   :  { %v144_v55 = vpop.f32.mrf.mxu1 }
 0x124   :  { %v291_v63 = vpop.f32.mrf.mxu2 }
 0x125   :  { %v292_v2 = vadd.f32 %v582_v1, %v291_v63 }
 0x12c   :  { %v293_v0 = vpop.f32.mrf.mxu2 }
 0x134   :  { %v304_v3 = vpop.f32.mrf.mxu3 }
 0x135   :  { %v305_v4 = vadd.f32 %v304_v3, %v292_v2 }
 0x137   :  { %v308_v6 = vmax.f32 %v305_v4, 0.0 }
 0x139   :  { %v313_v7 = vadd.f32 %v583_v5, %v308_v6 }
 0x13b   :  { %v314_v8 = vmax.f32 %v313_v7, 0.0 }
 0x13c   :  { %v306_v9 = vpop.f32.mrf.mxu3 }
 0x13d   :  { %v315_v10 = vpack.c.bf16 %v314_v8, %v314_v8 }
 0x13f   :  { %392 = vmatmul.bf16.vlgmr.msra.gmra.mxu0 %v315_v10 }
 0x1bc   :  { %v393_v12 = vpop.f32.mrf.mxu0 }
 0x1bd   :  { %v394_v13 = vadd.f32 %v584_v11, %v393_v12 }
 0x1bf   :  { %v398_v14 = vsel %vm397_vm1, %v394_v13, -inf }
 0x1c0   :  { %399 = vmax.xlane.f32.xlu0 %v398_v14 }
 0x1c4   :  { %v395_v15 = vpop.f32.mrf.mxu0 }
 0x233   :  { %v400_v16 = vpop.xlane.xlu0 %399 }
 0x234   :  { %v401_v17 = vsub.f32 %v394_v13, %v400_v16 }
 0x236   :  { %v402_v18 = vmul.f32 1.442695, %v401_v17 }
 0x238   :  { %585 = vpow2.f32 %v402_v18 }
 0x23e   :  { %v586_v19 = vpop.eup %585 }
 0x23f   :  { %v404_v20 = vsel %vm397_vm1, %v586_v19, 0.0 }
 0x240   :  { %405 = vadd.xlane.f32.xlu0 %v404_v20 }
 0x2b3   :  { %v406_v21 = vpop.xlane.xlu0 %405 }
 0x2b4   :  { %587 = vrcp.f32 %v406_v21 }
 0x2ba   :  { %v588_v22 = vpop.eup %587 }
 0x2bb   :  { %v408_v23 = vmul.f32 %v588_v22, %v586_v19 }
 0x2bd   :  { %409 = vst.msk [vmem:[%s796_s8] sm:$0xff] %vm397_vm1, %v408_v23 }
 0x2be   :  { %414 = vsyncpa [#allocation3], 1 }
 0x2bf   :  { %415 = vsyncpa [#allocation5], 1 }

</bundles_post_ra>
